<compile_context>
chip_gen: v7x
topology: tpu7x:2x2x1
jax: 0.10.0
libtpu: 0.0.40
codegen_flags: <defaults>
</compile_context>

<pallas_src>
import functools

import jax
import jax.numpy as jnp
from jax import lax
from jax.experimental import pallas as pl
from jax.experimental.pallas import tpu as pltpu


def _switching_rnn_kernel(pre_ref, h0_ref, whh_ref, sel_ref, sum_ref,
                          out_ref, h_scr, chunk_scr, *,
                          block_t, block_b, unroll):
    """One (batch-block, time-chunk) grid step of the switching-RNN recurrence.

    pre_ref   : (block_t, Bb, L)  selection-folded input projection (+ biases)
    h0_ref    : (Bb, L)           initial hidden state for this batch block
    whh_ref   : (L, K*L)          W_hh^T (shared across batch/time)
    sel_ref   : (Bb, K*L)         selection probs repeated per latent dim
    sum_ref   : (K*L, L)          stacked-identity mixture-sum matrix
    out_ref   : (Bb, block_t, L)  batch-major output block for this chunk
    h_scr     : (Bb, L) f32       hidden carry, persists across time chunks
    chunk_scr : (block_t, Bb, L)  time-major staging buffer for this chunk
    """
    # New batch block (time-chunk index 0) -> (re)initialize the hidden carry.
    @pl.when(pl.program_id(1) == 0)
    def _():
        h_scr[...] = h0_ref[...].astype(jnp.float32)

    whh = whh_ref[...]     # loaded once per chunk, reused across block_t steps
    sel = sel_ref[...].astype(jnp.float32)
    summ = sum_ref[...]

    def step(s, h):
        # (h @ W_hh^T) -> (Bb, K*L); weight by selection probs; sum the K LDS
        # blocks via the stacked identity; add the precomputed input term.
        lat = jnp.dot(h.astype(whh.dtype), whh,
                      preferred_element_type=jnp.float32)
        mix = jnp.dot((lat * sel).astype(summ.dtype), summ,
                      preferred_element_type=jnp.float32)
        h_new = pre_ref[s].astype(jnp.float32) + mix
        chunk_scr[s] = h_new            # dense time-major store (sublane = Bb)
        return h_new

    h_scr[...] = lax.fori_loop(0, block_t, step, h_scr[...], unroll=unroll)

    # Swapped writeback (time-major scratch -> batch-major HBM block): one
    # dense (block_t, L) store per batch row, once per chunk, off the serial
    # critical path.  Removes the old post-kernel (T,B,L)->(B,T,L) transpose
    # (a full extra HBM read+write of the largest tensor).
    for b in range(block_b):            # block_b is a static Python int
        out_ref[b] = chunk_scr[:, b, :].astype(out_ref.dtype)


def switching_rnn_forward(x, h0, selection_probs, params, *,
                          block_t=None, block_b=None,
                          stream_dtype=jnp.float32,
                          vmem_limit_bytes=48 << 20,
                          stream_budget_bytes=24 << 20):
    """x: (B, T, I), h0: (B, L), selection_probs: (B, K).

    Returns (states (B, T, L), hidden (B, L)) matching the PyTorch module.
    """
    W_ih, b_ih, W_hh, b_hh, bias = params     # torch Linear convention: (out, in)
    B, T, I = x.shape
    L = h0.shape[1]
    KL = W_ih.shape[0]
    K = KL // L
    f32 = jnp.float32

    sel = selection_probs.astype(f32)                          # (B, K)
    b_total = (b_ih + b_hh + bias).astype(f32)                 # (K*L,)

    # ---- Input path: fold selection into the projection weights (wrapper) --
    # pre_sel[t,b,l] = sum_i x[b,t,i] * W_ih_eff[b,i,l] + b_eff[b,l], with
    # W_ih_eff[b] = sum_k sel[b,k] * W_ih[k] and b_eff[b] = sel[b] @ b_total.
    w_ih_eff = jnp.einsum('bk,kli->bil', sel,
                          W_ih.astype(f32).reshape(K, L, I))   # (B, I, L)
    b_eff = sel @ b_total.reshape(K, L)                        # (B, L)
    pre_sel = (jnp.einsum('bti,bil->tbl', x.astype(f32), w_ih_eff)
               + b_eff[None, :, :]).astype(stream_dtype)       # (T, B, L)

    # ---- Recurrent operands (resident across the grid) ----------------------
    w_hh_t = W_hh.T.astype(stream_dtype)                       # (L, K*L)
    sel_exp = jnp.repeat(sel, L, axis=1)                       # (B, K*L), k-major
    sum_mat = jnp.tile(jnp.eye(L, dtype=f32), (K, 1)).astype(stream_dtype)

    # ---- Blocking ------------------------------------------------------------
    if block_b is None:
        # Megacore split only when each half keeps >= 8 batch sublanes;
        # splitting a small batch just starves the MXU M dimension.
        block_b = B // 2 if (B % 16 == 0) else B
    assert B % block_b == 0, "block_b must divide B"

    itemsize = jnp.dtype(stream_dtype).itemsize
    if block_t is None:
        # Per-timestep VMEM footprint of the streamed/staged blocks:
        #   pre block (x2 double-buffered) + out block (x2, f32) + chunk scratch.
        per_step = block_b * L * (2 * itemsize + 2 * 4 + 4)
        block_t = int(max(1, min(T, stream_budget_bytes // per_step, 1024)))
    if block_t >= T:
        block_t = T                       # single chunk: block dim == full dim
    else:
        block_t = min(T, max(8, (block_t // 8) * 8))   # keep (block_t, L) tiling clean
    unroll = int(min(8, block_t))          # fixed partial unroll

    nt = pl.cdiv(T, block_t)
    Tp = nt * block_t
    if Tp != T:
        # Zero-pad time; padded steps run strictly after every real step of
        # their batch block, so they never feed a valid timestep, and their
        # output rows are sliced off below.
        pre_sel = jnp.pad(pre_sel, ((0, Tp - T), (0, 0), (0, 0)))

    kernel = functools.partial(_switching_rnn_kernel,
                               block_t=block_t, block_b=block_b, unroll=unroll)

    states = pl.pallas_call(
        kernel,
        out_shape=jax.ShapeDtypeStruct((B, Tp, L), f32),
        grid_spec=pltpu.PrefetchScalarGridSpec(
            num_scalar_prefetch=0,
            grid=(B // block_b, nt),            # (batch: parallel, time: serial)
            in_specs=[
                pl.BlockSpec((block_t, block_b, L), lambda bi, ti: (ti, bi, 0)),
                pl.BlockSpec((block_b, L), lambda bi, ti: (bi, 0)),
                pl.BlockSpec((L, KL), lambda bi, ti: (0, 0)),
                pl.BlockSpec((block_b, KL), lambda bi, ti: (bi, 0)),
                pl.BlockSpec((KL, L), lambda bi, ti: (0, 0)),
            ],
            out_specs=pl.BlockSpec((block_b, block_t, L),
                                   lambda bi, ti: (bi, ti, 0)),
            scratch_shapes=[
                pltpu.VMEM((block_b, L), f32),            # hidden carry
                pltpu.VMEM((block_t, block_b, L), f32),   # chunk staging buffer
            ],
        ),
        compiler_params=pltpu.CompilerParams(
            dimension_semantics=("parallel", "arbitrary"),
            vmem_limit_bytes=vmem_limit_bytes),
    )(pre_sel, h0.astype(f32), w_hh_t, sel_exp, sum_mat)

    if Tp != T:
        states = states[:, :T, :]           # drop time padding
    hidden = states[:, T - 1, :]            # (B, L)
    return states, hidden


def _reference_forward(x, h0, sel, params):
    """Pure-JAX reference mirroring the PyTorch loop exactly."""
    W_ih, b_ih, W_hh, b_hh, bias = params
    B = x.shape[0]
    K = sel.shape[1]
    L = h0.shape[1]

    def step(h, x_t):
        lat_ih = x_t @ W_ih.T + b_ih
        lat_hh = h @ W_hh.T + b_hh
        combined = (lat_ih + lat_hh + bias).reshape(B, K, L)
        h_new = jnp.sum(combined * sel[:, :, None], axis=1)
        return h_new, h_new

    h_last, states_tm = jax.lax.scan(step, h0, jnp.transpose(x, (1, 0, 2)))
    return jnp.transpose(states_tm, (1, 0, 2)), h_last


if __name__ == "__main__":
    # Small, module-consistent shapes.
    B, T, I, L, K = 2, 8, 16, 32, 4
    KL = K * L

    key = jax.random.PRNGKey(0)
    ks = jax.random.split(key, 8)
    # Deterministic synthetic parameters (torch Linear shapes: (out, in)).
    W_ih = jax.random.normal(ks[0], (KL, I), jnp.float32) * 0.1
    b_ih = jax.random.normal(ks[1], (KL,), jnp.float32) * 0.1
    W_hh = jax.random.normal(ks[2], (KL, L), jnp.float32) * 0.1
    b_hh = jax.random.normal(ks[3], (KL,), jnp.float32) * 0.1
    bias = jax.random.normal(ks[4], (KL,), jnp.float32)
    params = (W_ih, b_ih, W_hh, b_hh, bias)

    x = jax.random.normal(ks[5], (B, T, I), jnp.float32)
    h0 = jax.random.normal(ks[6], (B, L), jnp.float32)
    sel_logits = jax.random.normal(ks[7], (B, K), jnp.float32)
    selection_probs = jax.nn.softmax(sel_logits, axis=-1)

    states, hidden = switching_rnn_forward(x, h0, selection_probs, params)
    states = jax.block_until_ready(states)
    hidden = jax.block_until_ready(hidden)

    ref_states, ref_hidden = _reference_forward(x, h0, selection_probs, params)
    assert states.shape == (B, T, L) and hidden.shape == (B, L)
    assert jnp.allclose(states, ref_states, rtol=1e-3, atol=1e-3)
    assert jnp.allclose(hidden, ref_hidden, rtol=1e-3, atol=1e-3)

    print("KERNEL_OK")
</pallas_src>

<mosaic_0001>
module attributes {stable_mosaic.version = 11 : i64} {
  func.func @_switching_rnn_kernel(%arg0: i32, %arg1: i32, %arg2: memref<8x2x32xf32, #tpu.memory_space<vmem>>, %arg3: memref<2x32xf32, #tpu.memory_space<vmem>>, %arg4: memref<32x128xf32, #tpu.memory_space<vmem>>, %arg5: memref<2x128xf32, #tpu.memory_space<vmem>>, %arg6: memref<128x32xf32, #tpu.memory_space<vmem>>, %arg7: memref<2x8x32xf32, #tpu.memory_space<vmem>>, %arg8: memref<2x32xf32, #tpu.memory_space<vmem>>, %arg9: memref<8x2x32xf32, #tpu.memory_space<vmem>>) attributes {dimension_semantics = [#tpu.dimension_semantics<parallel>, #tpu.dimension_semantics<arbitrary>], iteration_bounds = array<i64: 1, 1>, scalar_prefetch = 0 : i64, scratch_operands = 2 : i64, tpu.core_type = #tpu.core_type<tc>, window_params = [{transform_indices = @transform_0, window_bounds = array<i64: 8, 2, 32>}, {transform_indices = @transform_1, window_bounds = array<i64: 2, 32>}, {pipeline_mode = #tpu.pipeline_mode<synchronous>, transform_indices = @transform_2, window_bounds = array<i64: 32, 128>}, {transform_indices = @transform_3, window_bounds = array<i64: 2, 128>}, {pipeline_mode = #tpu.pipeline_mode<synchronous>, transform_indices = @transform_4, window_bounds = array<i64: 128, 32>}, {transform_indices = @transform_5, window_bounds = array<i64: 2, 8, 32>}]} {
    %c0_i32 = arith.constant 0 : i32
    %0 = arith.cmpi eq, %arg1, %c0_i32 : i32
    %1 = arith.extui %0 : i1 to i32
    %c0_i32_0 = arith.constant 0 : i32
    %2 = arith.cmpi ne, %1, %c0_i32_0 : i32
    scf.if %2 {
      %c0_69 = arith.constant 0 : index
      %c0_70 = arith.constant 0 : index
      %106 = vector.load %arg3[%c0_69, %c0_70] : memref<2x32xf32, #tpu.memory_space<vmem>>, vector<2x32xf32>
      %c0_71 = arith.constant 0 : index
      %c0_72 = arith.constant 0 : index
      %107 = vector.load %arg8[%c0_71, %c0_72] : memref<2x32xf32, #tpu.memory_space<vmem>>, vector<2x32xf32>
      tpu.vector_store %arg8[%c0_71, %c0_72], %106 {strides = array<i32>} : memref<2x32xf32, #tpu.memory_space<vmem>>, vector<2x32xf32>,
    } else {
    }
    %c0 = arith.constant 0 : index
    %c0_1 = arith.constant 0 : index
    %3 = vector.load %arg4[%c0, %c0_1] : memref<32x128xf32, #tpu.memory_space<vmem>>, vector<32x128xf32>
    %c0_2 = arith.constant 0 : index
    %c0_3 = arith.constant 0 : index
    %4 = vector.load %arg5[%c0_2, %c0_3] : memref<2x128xf32, #tpu.memory_space<vmem>>, vector<2x128xf32>
    %c0_4 = arith.constant 0 : index
    %c0_5 = arith.constant 0 : index
    %5 = vector.load %arg6[%c0_4, %c0_5] : memref<128x32xf32, #tpu.memory_space<vmem>>, vector<128x32xf32>
    %c0_6 = arith.constant 0 : index
    %c0_7 = arith.constant 0 : index
    %6 = vector.load %arg8[%c0_6, %c0_7] : memref<2x32xf32, #tpu.memory_space<vmem>>, vector<2x32xf32>
    %c0_i32_8 = arith.constant 0 : i32
    %cst = arith.constant dense<0.000000e+00> : vector<2x128xf32>
    %7 = tpu.matmul %6, %3, %cst {dimension_numbers = #tpu.dot_dimension_numbers<[1], [0], [0], [1], [0, 0, 1, 1], [], []>} : vector<2x32xf32>, vector<32x128xf32>, vector<2x128xf32> -> vector<2x128xf32>
    %8 = arith.mulf %7, %4 : vector<2x128xf32>
    %cst_9 = arith.constant dense<0.000000e+00> : vector<2x32xf32>
    %9 = tpu.matmul %8, %5, %cst_9 {dimension_numbers = #tpu.dot_dimension_numbers<[1], [0], [0], [1], [0, 0, 1, 1], [], []>} : vector<2x128xf32>, vector<128x32xf32>, vector<2x32xf32> -> vector<2x32xf32>
    %10 = arith.index_cast %c0_i32_8 : i32 to index
    %c0_10 = arith.constant 0 : index
    %c0_11 = arith.constant 0 : index
    %11 = vector.load %arg2[%10, %c0_10, %c0_11] : memref<8x2x32xf32, #tpu.memory_space<vmem>>, vector<1x2x32xf32>
    %12 = vector.shape_cast %11 : vector<1x2x32xf32> to vector<2x32xf32>
    %13 = arith.addf %12, %9 : vector<2x32xf32>
    %14 = arith.index_cast %c0_i32_8 : i32 to index
    %c0_12 = arith.constant 0 : index
    %c0_13 = arith.constant 0 : index
    %15 = vector.load %arg9[%14, %c0_12, %c0_13] : memref<8x2x32xf32, #tpu.memory_space<vmem>>, vector<1x2x32xf32>
    %16 = vector.shape_cast %15 : vector<1x2x32xf32> to vector<2x32xf32>
    %17 = vector.shape_cast %13 : vector<2x32xf32> to vector<1x2x32xf32>
    tpu.vector_store %arg9[%14, %c0_12, %c0_13], %17 {strides = array<i32>} : memref<8x2x32xf32, #tpu.memory_space<vmem>>, vector<1x2x32xf32>,
    %c1_i32 = arith.constant 1 : i32
    %cst_14 = arith.constant dense<0.000000e+00> : vector<2x128xf32>
    %18 = tpu.matmul %13, %3, %cst_14 {dimension_numbers = #tpu.dot_dimension_numbers<[1], [0], [0], [1], [0, 0, 1, 1], [], []>} : vector<2x32xf32>, vector<32x128xf32>, vector<2x128xf32> -> vector<2x128xf32>
    %19 = arith.mulf %18, %4 : vector<2x128xf32>
    %cst_15 = arith.constant dense<0.000000e+00> : vector<2x32xf32>
    %20 = tpu.matmul %19, %5, %cst_15 {dimension_numbers = #tpu.dot_dimension_numbers<[1], [0], [0], [1], [0, 0, 1, 1], [], []>} : vector<2x128xf32>, vector<128x32xf32>, vector<2x32xf32> -> vector<2x32xf32>
    %21 = arith.index_cast %c1_i32 : i32 to index
    %c0_16 = arith.constant 0 : index
    %c0_17 = arith.constant 0 : index
    %22 = vector.load %arg2[%21, %c0_16, %c0_17] : memref<8x2x32xf32, #tpu.memory_space<vmem>>, vector<1x2x32xf32>
    %23 = vector.shape_cast %22 : vector<1x2x32xf32> to vector<2x32xf32>
    %24 = arith.addf %23, %20 : vector<2x32xf32>
    %25 = arith.index_cast %c1_i32 : i32 to index
    %c0_18 = arith.constant 0 : index
    %c0_19 = arith.constant 0 : index
    %26 = vector.load %arg9[%25, %c0_18, %c0_19] : memref<8x2x32xf32, #tpu.memory_space<vmem>>, vector<1x2x32xf32>
    %27 = vector.shape_cast %26 : vector<1x2x32xf32> to vector<2x32xf32>
    %28 = vector.shape_cast %24 : vector<2x32xf32> to vector<1x2x32xf32>
    tpu.vector_store %arg9[%25, %c0_18, %c0_19], %28 {strides = array<i32>} : memref<8x2x32xf32, #tpu.memory_space<vmem>>, vector<1x2x32xf32>,
    %c2_i32 = arith.constant 2 : i32
    %cst_20 = arith.constant dense<0.000000e+00> : vector<2x128xf32>
    %29 = tpu.matmul %24, %3, %cst_20 {dimension_numbers = #tpu.dot_dimension_numbers<[1], [0], [0], [1], [0, 0, 1, 1], [], []>} : vector<2x32xf32>, vector<32x128xf32>, vector<2x128xf32> -> vector<2x128xf32>
    %30 = arith.mulf %29, %4 : vector<2x128xf32>
    %cst_21 = arith.constant dense<0.000000e+00> : vector<2x32xf32>
    %31 = tpu.matmul %30, %5, %cst_21 {dimension_numbers = #tpu.dot_dimension_numbers<[1], [0], [0], [1], [0, 0, 1, 1], [], []>} : vector<2x128xf32>, vector<128x32xf32>, vector<2x32xf32> -> vector<2x32xf32>
    %32 = arith.index_cast %c2_i32 : i32 to index
    %c0_22 = arith.constant 0 : index
    %c0_23 = arith.constant 0 : index
    %33 = vector.load %arg2[%32, %c0_22, %c0_23] : memref<8x2x32xf32, #tpu.memory_space<vmem>>, vector<1x2x32xf32>
    %34 = vector.shape_cast %33 : vector<1x2x32xf32> to vector<2x32xf32>
    %35 = arith.addf %34, %31 : vector<2x32xf32>
    %36 = arith.index_cast %c2_i32 : i32 to index
    %c0_24 = arith.constant 0 : index
    %c0_25 = arith.constant 0 : index
    %37 = vector.load %arg9[%36, %c0_24, %c0_25] : memref<8x2x32xf32, #tpu.memory_space<vmem>>, vector<1x2x32xf32>
    %38 = vector.shape_cast %37 : vector<1x2x32xf32> to vector<2x32xf32>
    %39 = vector.shape_cast %35 : vector<2x32xf32> to vector<1x2x32xf32>
    tpu.vector_store %arg9[%36, %c0_24, %c0_25], %39 {strides = array<i32>} : memref<8x2x32xf32, #tpu.memory_space<vmem>>, vector<1x2x32xf32>,
    %c3_i32 = arith.constant 3 : i32
    %cst_26 = arith.constant dense<0.000000e+00> : vector<2x128xf32>
    %40 = tpu.matmul %35, %3, %cst_26 {dimension_numbers = #tpu.dot_dimension_numbers<[1], [0], [0], [1], [0, 0, 1, 1], [], []>} : vector<2x32xf32>, vector<32x128xf32>, vector<2x128xf32> -> vector<2x128xf32>
    %41 = arith.mulf %40, %4 : vector<2x128xf32>
    %cst_27 = arith.constant dense<0.000000e+00> : vector<2x32xf32>
    %42 = tpu.matmul %41, %5, %cst_27 {dimension_numbers = #tpu.dot_dimension_numbers<[1], [0], [0], [1], [0, 0, 1, 1], [], []>} : vector<2x128xf32>, vector<128x32xf32>, vector<2x32xf32> -> vector<2x32xf32>
    %43 = arith.index_cast %c3_i32 : i32 to index
    %c0_28 = arith.constant 0 : index
    %c0_29 = arith.constant 0 : index
    %44 = vector.load %arg2[%43, %c0_28, %c0_29] : memref<8x2x32xf32, #tpu.memory_space<vmem>>, vector<1x2x32xf32>
    %45 = vector.shape_cast %44 : vector<1x2x32xf32> to vector<2x32xf32>
    %46 = arith.addf %45, %42 : vector<2x32xf32>
    %47 = arith.index_cast %c3_i32 : i32 to index
    %c0_30 = arith.constant 0 : index
    %c0_31 = arith.constant 0 : index
    %48 = vector.load %arg9[%47, %c0_30, %c0_31] : memref<8x2x32xf32, #tpu.memory_space<vmem>>, vector<1x2x32xf32>
    %49 = vector.shape_cast %48 : vector<1x2x32xf32> to vector<2x32xf32>
    %50 = vector.shape_cast %46 : vector<2x32xf32> to vector<1x2x32xf32>
    tpu.vector_store %arg9[%47, %c0_30, %c0_31], %50 {strides = array<i32>} : memref<8x2x32xf32, #tpu.memory_space<vmem>>, vector<1x2x32xf32>,
    %c4_i32 = arith.constant 4 : i32
    %cst_32 = arith.constant dense<0.000000e+00> : vector<2x128xf32>
    %51 = tpu.matmul %46, %3, %cst_32 {dimension_numbers = #tpu.dot_dimension_numbers<[1], [0], [0], [1], [0, 0, 1, 1], [], []>} : vector<2x32xf32>, vector<32x128xf32>, vector<2x128xf32> -> vector<2x128xf32>
    %52 = arith.mulf %51, %4 : vector<2x128xf32>
    %cst_33 = arith.constant dense<0.000000e+00> : vector<2x32xf32>
    %53 = tpu.matmul %52, %5, %cst_33 {dimension_numbers = #tpu.dot_dimension_numbers<[1], [0], [0], [1], [0, 0, 1, 1], [], []>} : vector<2x128xf32>, vector<128x32xf32>, vector<2x32xf32> -> vector<2x32xf32>
    %54 = arith.index_cast %c4_i32 : i32 to index
    %c0_34 = arith.constant 0 : index
    %c0_35 = arith.constant 0 : index
    %55 = vector.load %arg2[%54, %c0_34, %c0_35] : memref<8x2x32xf32, #tpu.memory_space<vmem>>, vector<1x2x32xf32>
    %56 = vector.shape_cast %55 : vector<1x2x32xf32> to vector<2x32xf32>
    %57 = arith.addf %56, %53 : vector<2x32xf32>
    %58 = arith.index_cast %c4_i32 : i32 to index
    %c0_36 = arith.constant 0 : index
    %c0_37 = arith.constant 0 : index
    %59 = vector.load %arg9[%58, %c0_36, %c0_37] : memref<8x2x32xf32, #tpu.memory_space<vmem>>, vector<1x2x32xf32>
    %60 = vector.shape_cast %59 : vector<1x2x32xf32> to vector<2x32xf32>
    %61 = vector.shape_cast %57 : vector<2x32xf32> to vector<1x2x32xf32>
    tpu.vector_store %arg9[%58, %c0_36, %c0_37], %61 {strides = array<i32>} : memref<8x2x32xf32, #tpu.memory_space<vmem>>, vector<1x2x32xf32>,
    %c5_i32 = arith.constant 5 : i32
    %cst_38 = arith.constant dense<0.000000e+00> : vector<2x128xf32>
    %62 = tpu.matmul %57, %3, %cst_38 {dimension_numbers = #tpu.dot_dimension_numbers<[1], [0], [0], [1], [0, 0, 1, 1], [], []>} : vector<2x32xf32>, vector<32x128xf32>, vector<2x128xf32> -> vector<2x128xf32>
    %63 = arith.mulf %62, %4 : vector<2x128xf32>
    %cst_39 = arith.constant dense<0.000000e+00> : vector<2x32xf32>
    %64 = tpu.matmul %63, %5, %cst_39 {dimension_numbers = #tpu.dot_dimension_numbers<[1], [0], [0], [1], [0, 0, 1, 1], [], []>} : vector<2x128xf32>, vector<128x32xf32>, vector<2x32xf32> -> vector<2x32xf32>
    %65 = arith.index_cast %c5_i32 : i32 to index
    %c0_40 = arith.constant 0 : index
    %c0_41 = arith.constant 0 : index
    %66 = vector.load %arg2[%65, %c0_40, %c0_41] : memref<8x2x32xf32, #tpu.memory_space<vmem>>, vector<1x2x32xf32>
    %67 = vector.shape_cast %66 : vector<1x2x32xf32> to vector<2x32xf32>
    %68 = arith.addf %67, %64 : vector<2x32xf32>
    %69 = arith.index_cast %c5_i32 : i32 to index
    %c0_42 = arith.constant 0 : index
    %c0_43 = arith.constant 0 : index
    %70 = vector.load %arg9[%69, %c0_42, %c0_43] : memref<8x2x32xf32, #tpu.memory_space<vmem>>, vector<1x2x32xf32>
    %71 = vector.shape_cast %70 : vector<1x2x32xf32> to vector<2x32xf32>
    %72 = vector.shape_cast %68 : vector<2x32xf32> to vector<1x2x32xf32>
    tpu.vector_store %arg9[%69, %c0_42, %c0_43], %72 {strides = array<i32>} : memref<8x2x32xf32, #tpu.memory_space<vmem>>, vector<1x2x32xf32>,
    %c6_i32 = arith.constant 6 : i32
    %cst_44 = arith.constant dense<0.000000e+00> : vector<2x128xf32>
    %73 = tpu.matmul %68, %3, %cst_44 {dimension_numbers = #tpu.dot_dimension_numbers<[1], [0], [0], [1], [0, 0, 1, 1], [], []>} : vector<2x32xf32>, vector<32x128xf32>, vector<2x128xf32> -> vector<2x128xf32>
    %74 = arith.mulf %73, %4 : vector<2x128xf32>
    %cst_45 = arith.constant dense<0.000000e+00> : vector<2x32xf32>
    %75 = tpu.matmul %74, %5, %cst_45 {dimension_numbers = #tpu.dot_dimension_numbers<[1], [0], [0], [1], [0, 0, 1, 1], [], []>} : vector<2x128xf32>, vector<128x32xf32>, vector<2x32xf32> -> vector<2x32xf32>
    %76 = arith.index_cast %c6_i32 : i32 to index
    %c0_46 = arith.constant 0 : index
    %c0_47 = arith.constant 0 : index
    %77 = vector.load %arg2[%76, %c0_46, %c0_47] : memref<8x2x32xf32, #tpu.memory_space<vmem>>, vector<1x2x32xf32>
    %78 = vector.shape_cast %77 : vector<1x2x32xf32> to vector<2x32xf32>
    %79 = arith.addf %78, %75 : vector<2x32xf32>
    %80 = arith.index_cast %c6_i32 : i32 to index
    %c0_48 = arith.constant 0 : index
    %c0_49 = arith.constant 0 : index
    %81 = vector.load %arg9[%80, %c0_48, %c0_49] : memref<8x2x32xf32, #tpu.memory_space<vmem>>, vector<1x2x32xf32>
    %82 = vector.shape_cast %81 : vector<1x2x32xf32> to vector<2x32xf32>
    %83 = vector.shape_cast %79 : vector<2x32xf32> to vector<1x2x32xf32>
    tpu.vector_store %arg9[%80, %c0_48, %c0_49], %83 {strides = array<i32>} : memref<8x2x32xf32, #tpu.memory_space<vmem>>, vector<1x2x32xf32>,
    %c7_i32 = arith.constant 7 : i32
    %cst_50 = arith.constant dense<0.000000e+00> : vector<2x128xf32>
    %84 = tpu.matmul %79, %3, %cst_50 {dimension_numbers = #tpu.dot_dimension_numbers<[1], [0], [0], [1], [0, 0, 1, 1], [], []>} : vector<2x32xf32>, vector<32x128xf32>, vector<2x128xf32> -> vector<2x128xf32>
    %85 = arith.mulf %84, %4 : vector<2x128xf32>
    %cst_51 = arith.constant dense<0.000000e+00> : vector<2x32xf32>
    %86 = tpu.matmul %85, %5, %cst_51 {dimension_numbers = #tpu.dot_dimension_numbers<[1], [0], [0], [1], [0, 0, 1, 1], [], []>} : vector<2x128xf32>, vector<128x32xf32>, vector<2x32xf32> -> vector<2x32xf32>
    %87 = arith.index_cast %c7_i32 : i32 to index
    %c0_52 = arith.constant 0 : index
    %c0_53 = arith.constant 0 : index
    %88 = vector.load %arg2[%87, %c0_52, %c0_53] : memref<8x2x32xf32, #tpu.memory_space<vmem>>, vector<1x2x32xf32>
    %89 = vector.shape_cast %88 : vector<1x2x32xf32> to vector<2x32xf32>
    %90 = arith.addf %89, %86 : vector<2x32xf32>
    %91 = arith.index_cast %c7_i32 : i32 to index
    %c0_54 = arith.constant 0 : index
    %c0_55 = arith.constant 0 : index
    %92 = vector.load %arg9[%91, %c0_54, %c0_55] : memref<8x2x32xf32, #tpu.memory_space<vmem>>, vector<1x2x32xf32>
    %93 = vector.shape_cast %92 : vector<1x2x32xf32> to vector<2x32xf32>
    %94 = vector.shape_cast %90 : vector<2x32xf32> to vector<1x2x32xf32>
    tpu.vector_store %arg9[%91, %c0_54, %c0_55], %94 {strides = array<i32>} : memref<8x2x32xf32, #tpu.memory_space<vmem>>, vector<1x2x32xf32>,
    %c8_i32 = arith.constant 8 : i32
    %c0_56 = arith.constant 0 : index
    %c0_57 = arith.constant 0 : index
    %95 = vector.load %arg8[%c0_56, %c0_57] : memref<2x32xf32, #tpu.memory_space<vmem>>, vector<2x32xf32>
    tpu.vector_store %arg8[%c0_56, %c0_57], %90 {strides = array<i32>} : memref<2x32xf32, #tpu.memory_space<vmem>>, vector<2x32xf32>,
    %c0_58 = arith.constant 0 : index
    %c0_59 = arith.constant 0 : index
    %c0_60 = arith.constant 0 : index
    %96 = vector.load %arg9[%c0_58, %c0_59, %c0_60] : memref<8x2x32xf32, #tpu.memory_space<vmem>>, vector<8x1x32xf32>
    %97 = vector.shape_cast %96 : vector<8x1x32xf32> to vector<8x32xf32>
    %c0_61 = arith.constant 0 : index
    %c0_62 = arith.constant 0 : index
    %c0_63 = arith.constant 0 : index
    %98 = vector.load %arg7[%c0_61, %c0_62, %c0_63] : memref<2x8x32xf32, #tpu.memory_space<vmem>>, vector<1x8x32xf32>
    %99 = vector.shape_cast %98 : vector<1x8x32xf32> to vector<8x32xf32>
    %100 = vector.shape_cast %97 : vector<8x32xf32> to vector<1x8x32xf32>
    tpu.vector_store %arg7[%c0_61, %c0_62, %c0_63], %100 {strides = array<i32>} : memref<2x8x32xf32, #tpu.memory_space<vmem>>, vector<1x8x32xf32>,
    %c0_64 = arith.constant 0 : index
    %c1 = arith.constant 1 : index
    %c0_65 = arith.constant 0 : index
    %101 = vector.load %arg9[%c0_64, %c1, %c0_65] : memref<8x2x32xf32, #tpu.memory_space<vmem>>, vector<8x1x32xf32>
    %102 = vector.shape_cast %101 : vector<8x1x32xf32> to vector<8x32xf32>
    %c1_66 = arith.constant 1 : index
    %c0_67 = arith.constant 0 : index
    %c0_68 = arith.constant 0 : index
    %103 = vector.load %arg7[%c1_66, %c0_67, %c0_68] : memref<2x8x32xf32, #tpu.memory_space<vmem>>, vector<1x8x32xf32>
    %104 = vector.shape_cast %103 : vector<1x8x32xf32> to vector<8x32xf32>
    %105 = vector.shape_cast %102 : vector<8x32xf32> to vector<1x8x32xf32>
    tpu.vector_store %arg7[%c1_66, %c0_67, %c0_68], %105 {strides = array<i32>} : memref<2x8x32xf32, #tpu.memory_space<vmem>>, vector<1x8x32xf32>,
    return
  }
  func.func @transform_0(%arg0: i32, %arg1: i32) -> (i32, i32, i32) {
    %c0_i32 = arith.constant 0 : i32
    %c0_i32_0 = arith.constant 0 : i32
    return %arg1, %arg0, %c0_i32 : i32, i32, i32
  }
  func.func @transform_1(%arg0: i32, %arg1: i32) -> (i32, i32) {
    %c0_i32 = arith.constant 0 : i32
    %c0_i32_0 = arith.constant 0 : i32
    return %arg0, %c0_i32 : i32, i32
  }
  func.func @transform_2(%arg0: i32, %arg1: i32) -> (i32, i32) {
    %c0_i32 = arith.constant 0 : i32
    %c0_i32_0 = arith.constant 0 : i32
    %c0_i32_1 = arith.constant 0 : i32
    return %c0_i32, %c0_i32_0 : i32, i32
  }
  func.func @transform_3(%arg0: i32, %arg1: i32) -> (i32, i32) {
    %c0_i32 = arith.constant 0 : i32
    %c0_i32_0 = arith.constant 0 : i32
    return %arg0, %c0_i32 : i32, i32
  }
  func.func @transform_4(%arg0: i32, %arg1: i32) -> (i32, i32) {
    %c0_i32 = arith.constant 0 : i32
    %c0_i32_0 = arith.constant 0 : i32
    %c0_i32_1 = arith.constant 0 : i32
    return %c0_i32, %c0_i32_0 : i32, i32
  }
  func.func @transform_5(%arg0: i32, %arg1: i32) -> (i32, i32, i32) {
    %c0_i32 = arith.constant 0 : i32
    %c0_i32_0 = arith.constant 0 : i32
    return %arg0, %arg1, %c0_i32 : i32, i32, i32
  }
}

</mosaic_0001>

<bundles_post_ra>
// kernel: tpu_custom_call.1
= control target key start
LH: loop header
LB: loop body
LE: loop exit
PB: predicated region body
PF: predicated region fallthrough
CT: control target
= control target key end

     0   :  { %v2160_v3 = vmov 0.0|0.0   ;;  %vm2161_vm0 = vmmov 0   ;;  %v2162_v6 = vmov 0.0   ;;  %vm26_vm1 = vcmask 254976   ;;  %s2550_s0 = inlined_call_operand.vmem [shape: f32[8,2,32], index: 0, kind: input, shape index: {}]   ;;  %s2551_s1 = inlined_call_operand.vmem [shape: f32[2,32], index: 1, kind: input, shape index: {}]   ;;  %s2552_s2 = inlined_call_operand.vmem [shape: f32[32,128], index: 2, kind: input, shape index: {}]   ;;  %s2553_s3 = inlined_call_operand.vmem [shape: f32[2,128], index: 3, kind: input, shape index: {}]   ;;  %s2554_s4 = inlined_call_operand.vmem [shape: f32[128,32], index: 4, kind: input, shape index: {}]   ;;  %s2555_s5 = inlined_call_operand.hbm [shape: f32[2,8,32], index: 5, kind: output, shape index: {}]  }
   0x1   :  { %v28_v0 = vld [vmem:[%s2552_s2] sm:$0xff]  ;;  %v29_v1 = vld [vmem:[%s2552_s2 + $0x8] sm:$0xff]  ;;  %v30_v2 = vld [vmem:[%s2552_s2 + $0x10] sm:$0xff]  ;;  %1890 = vmatprep.subr.bf16.mxu1 %v2160_v3  ;;  %1530 = vmatprep.mubr.msk.f32.mxu1 %vm2161_vm0, %v2162_v6 }
   0x2   :  { %v2206_v4 = vpack.c.bf16 %v29_v1, %v28_v0  ;;  %v31_v5 = vld [vmem:[%s2552_s2 + $0x18] sm:$0xff]  ;;  %v25_v7 = vld [vmem:[%s2551_s1] sm:$0x3]  ;;  %1920 = vmatprep.subr.bf16.mxu0 %v2160_v3  ;;  %1576 = vmatprep.mubr.msk.f32.mxu0 %vm2161_vm0, %v2162_v6  ;;  %v34_v10 = vld [vmem:[%s2554_s4 + $0x8] sm:$0xff] }
   0x3   :  { %27 = vst.msk [vmem:[#allocation2] sm:$0x3] %vm26_vm1, %v25_v7  ;;  %v2221_v8 = vpack.c.bf16 %v31_v5, %v30_v2  ;;  %v33_v9 = vld [vmem:[%s2554_s4] sm:$0xff] }
   0x4   :  { %1892 = vmatpush3.bf16.msra.mxu1 %v2206_v4  ;;  %1922 = vmatpush3.bf16.msra.mxu0 %v2206_v4 }
   0x5   :  { %1893 = vmatprep.subr.bf16.mxu1 %v2160_v3  ;;  %1923 = vmatprep.subr.bf16.mxu0 %v2160_v3 }
   0x6   :  { %10 = vsyncpa [#allocation5], 0  ;;  %vm50_vm2 = vcmask 261120   ;;  %v2233_v11 = vpack.c.bf16 %v34_v10, %v33_v9  ;;  %v35_v12 = vld [vmem:[%s2554_s4 + $0x10] sm:$0xff]  ;;  %v36_v13 = vld [vmem:[%s2554_s4 + $0x18] sm:$0xff]  ;;  %vm1260_vm3 = vcmask 1041409  }
   0x7   :  { %v2246_v15 = vpack.c.bf16 %v36_v13, %v35_v12  ;;  %v37_v16 = vld [vmem:[%s2554_s4 + $0x20] sm:$0xff]  ;;  %v38_v17 = vld [vmem:[%s2554_s4 + $0x28] sm:$0xff]  ;;  %v39_v19 = vld [vmem:[%s2554_s4 + $0x30] sm:$0xff]  ;;  %vm1263_vm4 = vcmask 1042434   ;;  %vm1266_vm5 = vcmask 1043459   ;;  %vm1269_vm6 = vcmask 1044484  }
   0x8   :  { %1895 = vmatpush3.bf16.msra.mxu1 %v2221_v8  ;;  %1925 = vmatpush3.bf16.msra.mxu0 %v2221_v8  ;;  %v2258_v18 = vpack.c.bf16 %v38_v17, %v37_v16  ;;  %v40_v20 = vld [vmem:[%s2554_s4 + $0x38] sm:$0xff]  ;;  %v41_v22 = vld [vmem:[%s2554_s4 + $0x40] sm:$0xff]  ;;  %v42_v23 = vld [vmem:[%s2554_s4 + $0x48] sm:$0xff]  ;;  %vm1272_vm7 = vcmask 1045509   ;;  %vm1275_vm8 = vcmask 1046534   ;;  %vm1278_vm9 = vcmask 1047559  }
   0x9   :  { %1896 = vmatprep.subr.bf16.mxu1 %v2160_v3  ;;  %1926 = vmatprep.subr.bf16.mxu0 %v2160_v3  ;;  %v2268_v21 = vpack.c.bf16 %v40_v20, %v39_v19  ;;  %v2278_v24 = vpack.c.bf16 %v42_v23, %v41_v22  ;;  %v43_v25 = vld [vmem:[%s2554_s4 + $0x50] sm:$0xff]  ;;  %v44_v26 = vld [vmem:[%s2554_s4 + $0x58] sm:$0xff]  ;;  %v45_v28 = vld [vmem:[%s2554_s4 + $0x60] sm:$0xff] }
   0xa   :  { %v49_v14 = vld [vmem:[#allocation2] sm:$0x3]  ;;  %v2288_v27 = vpack.c.bf16 %v44_v26, %v43_v25  ;;  %v46_v29 = vld [vmem:[%s2554_s4 + $0x68] sm:$0xff]  ;;  %v47_v31 = vld [vmem:[%s2554_s4 + $0x70] sm:$0xff] }
   0xb   :  { %1531 = vmatmul.mubr.msk.f32.vlgmr.msra.gmra.mrb[0].mxu1 %vm50_vm2, %v49_v14  ;;  %v2298_v30 = vpack.c.bf16 %v46_v29, %v45_v28  ;;  %v48_v32 = vld [vmem:[%s2554_s4 + $0x78] sm:$0xff]  ;;  %v2316_v34 = vld [vmem:[%s2553_s3] sm:$0x3]  ;;  %v1333_v45 = vld [vmem:[%s2550_s0 + $0x2] sm:$0x3] }
   0xc   :  { %1898 = vmatpush3.bf16.msra.mxu1 %v2233_v11  ;;  %1565 = vmatprep.mubr.msk.f32.mxu1 %vm2161_vm0, %v2162_v6  ;;  %v2309_v33 = vpack.c.bf16 %v48_v32, %v47_v31  ;;  %v195_v38 = vld [vmem:[%s2550_s0] sm:$0x3]  ;;  %v1335_v52 = vld [vmem:[%s2550_s0 + $0x4] sm:$0x3]  ;;  %v1337_v59 = vld [vmem:[%s2550_s0 + $0x6] sm:$0x3] }
   0xd   :  { %1899 = vmatprep.subr.bf16.mxu1 %v2160_v3  ;;  %v1339_v2 = vld [vmem:[%s2550_s0 + $0x8] sm:$0x3]  ;;  %v1341_v14 = vld [vmem:[%s2550_s0 + $0xa] sm:$0x3]  ;;  %v1343_v22 = vld [vmem:[%s2550_s0 + $0xc] sm:$0x3] }
  0x10   :  { %1901 = vmatpush3.bf16.msra.mxu1 %v2246_v15 }
  0x11   :  { %1902 = vmatprep.subr.bf16.mxu1 %v2160_v3 }
  0x14   :  { %1904 = vmatpush3.bf16.msra.mxu1 %v2258_v18 }
  0x15   :  { %1905 = vmatprep.subr.bf16.mxu1 %v2160_v3 }
  0x18   :  { %1907 = vmatpush3.bf16.msra.mxu1 %v2268_v21 }
  0x19   :  { %1908 = vmatprep.subr.bf16.mxu1 %v2160_v3 }
  0x1c   :  { %1910 = vmatpush3.bf16.msra.mxu1 %v2278_v24 }
  0x1d   :  { %1911 = vmatprep.subr.bf16.mxu1 %v2160_v3 }
  0x20   :  { %1913 = vmatpush3.bf16.msra.mxu1 %v2288_v27 }
  0x21   :  { %1914 = vmatprep.subr.bf16.mxu1 %v2160_v3 }
  0x24   :  { %1916 = vmatpush3.bf16.msra.mxu1 %v2298_v30 }
  0x25   :  { %1917 = vmatprep.subr.bf16.mxu1 %v2160_v3 }
  0x28   :  { %1919 = vmatpush3.bf16.msra.mxu1 %v2309_v33 }
  0x29   :  { %1950 = vmatprep.subr.bf16.mxu1 %v2160_v3 }
  0xde   :  { %v120_v35 = vpop.f32.mrb[0].mxu1 }
  0xdf   :  { %v124_v36 = vmul.f32 %v120_v35, %v2316_v34  ;;  %v1532_v37 = vpop.f32.mrb[1].mxu1 }
  0xe1   :  { %1566 = vmatmul.mubr.f32.vlgmr.msra.gmra.mrb[2].mxu1 %v124_v36 }
  0xe2   :  { %1952 = vmatpush3.bf16.msra.mxu1 %v2206_v4  ;;  %1622 = vmatprep.mubr.msk.f32.mxu1 %vm2161_vm0, %v2162_v6 }
  0xe3   :  { %1953 = vmatprep.subr.bf16.mxu1 %v2160_v3 }
  0xe6   :  { %1955 = vmatpush3.bf16.msra.mxu1 %v2221_v8 }
  0xe7   :  { %1956 = vmatprep.subr.bf16.mxu1 %v2160_v3 }
 0x1b4   :  { %v191_v39 = vpop.f32.mrb[2].mxu1 }
 0x1b5   :  { %v196_v40 = vadd.f32 %v195_v38, %v191_v39  ;;  %v1567_v41 = vpop.f32.mrb[3].mxu1 }
 0x1b7   :  { %198 = vst.msk [vmem:[#allocation3] sm:$0x3] %vm26_vm1, %v196_v40  ;;  %1577 = vmatmul.mubr.msk.f32.vlgmr.msra.gmra.mrb[0].mxu0 %vm50_vm2, %v196_v40 }
 0x1b8   :  { %1928 = vmatpush3.bf16.msra.mxu0 %v2233_v11  ;;  %1611 = vmatprep.mubr.msk.f32.mxu0 %vm2161_vm0, %v2162_v6 }
 0x1b9   :  { %1929 = vmatprep.subr.bf16.mxu0 %v2160_v3 }
 0x1bc   :  { %1931 = vmatpush3.bf16.msra.mxu0 %v2246_v15 }
 0x1bd   :  { %1932 = vmatprep.subr.bf16.mxu0 %v2160_v3 }
 0x1be   :  { %v1243_v35 = vld [vmem:[#allocation3] sm:$0x1]  ;;  %v1282_v38 = vld [vmem:[#allocation3 + $0x1] sm:$0x1] }
 0x1c0   :  { %1934 = vmatpush3.bf16.msra.mxu0 %v2258_v18 }
 0x1c1   :  { %1935 = vmatprep.subr.bf16.mxu0 %v2160_v3 }
 0x1c4   :  { %1937 = vmatpush3.bf16.msra.mxu0 %v2268_v21 }
 0x1c5   :  { %1938 = vmatprep.subr.bf16.mxu0 %v2160_v3 }
 0x1c8   :  { %1940 = vmatpush3.bf16.msra.mxu0 %v2278_v24 }
 0x1c9   :  { %1941 = vmatprep.subr.bf16.mxu0 %v2160_v3 }
 0x1cc   :  { %1943 = vmatpush3.bf16.msra.mxu0 %v2288_v27 }
 0x1cd   :  { %1944 = vmatprep.subr.bf16.mxu0 %v2160_v3 }
 0x1d0   :  { %1946 = vmatpush3.bf16.msra.mxu0 %v2298_v30 }
 0x1d1   :  { %1947 = vmatprep.subr.bf16.mxu0 %v2160_v3 }
 0x1d4   :  { %1949 = vmatpush3.bf16.msra.mxu0 %v2309_v33 }
 0x1d5   :  { %1980 = vmatprep.subr.bf16.mxu0 %v2160_v3 }
 0x28a   :  { %v268_v42 = vpop.f32.mrb[0].mxu0 }
 0x28b   :  { %v272_v43 = vmul.f32 %v268_v42, %v2316_v34  ;;  %v1578_v44 = vpop.f32.mrb[1].mxu0 }
 0x28d   :  { %1612 = vmatmul.mubr.f32.vlgmr.msra.gmra.mrb[2].mxu0 %v272_v43 }
 0x28e   :  { %1982 = vmatpush3.bf16.msra.mxu0 %v2206_v4  ;;  %1668 = vmatprep.mubr.msk.f32.mxu0 %vm2161_vm0, %v2162_v6 }
 0x28f   :  { %1983 = vmatprep.subr.bf16.mxu0 %v2160_v3 }
 0x292   :  { %1985 = vmatpush3.bf16.msra.mxu0 %v2221_v8 }
 0x293   :  { %1986 = vmatprep.subr.bf16.mxu0 %v2160_v3 }
 0x360   :  { %v339_v46 = vpop.f32.mrb[2].mxu0 }
 0x361   :  { %v345_v47 = vadd.f32 %v1333_v45, %v339_v46  ;;  %v1613_v48 = vpop.f32.mrb[3].mxu0 }
 0x363   :  { %347 = vst.msk [vmem:[#allocation3 + $0x2] sm:$0x3] %vm26_vm1, %v345_v47  ;;  %1623 = vmatmul.mubr.msk.f32.vlgmr.msra.gmra.mrb[4].mxu1 %vm50_vm2, %v345_v47 }
 0x364   :  { %1958 = vmatpush3.bf16.msra.mxu1 %v2233_v11  ;;  %1657 = vmatprep.mubr.msk.f32.mxu1 %vm2161_vm0, %v2162_v6 }
 0x365   :  { %1959 = vmatprep.subr.bf16.mxu1 %v2160_v3 }
 0x368   :  { %1961 = vmatpush3.bf16.msra.mxu1 %v2246_v15 }
 0x369   :  { %1962 = vmatprep.subr.bf16.mxu1 %v2160_v3 }
 0x36c   :  { %1964 = vmatpush3.bf16.msra.mxu1 %v2258_v18 }
 0x36d   :  { %1965 = vmatprep.subr.bf16.mxu1 %v2160_v3 }
 0x370   :  { %1967 = vmatpush3.bf16.msra.mxu1 %v2268_v21 }
 0x371   :  { %1968 = vmatprep.subr.bf16.mxu1 %v2160_v3 }
 0x374   :  { %1970 = vmatpush3.bf16.msra.mxu1 %v2278_v24 }
 0x375   :  { %1971 = vmatprep.subr.bf16.mxu1 %v2160_v3 }
 0x378   :  { %1973 = vmatpush3.bf16.msra.mxu1 %v2288_v27 }
 0x379   :  { %1974 = vmatprep.subr.bf16.mxu1 %v2160_v3 }
 0x37c   :  { %1976 = vmatpush3.bf16.msra.mxu1 %v2298_v30 }
 0x37d   :  { %1977 = vmatprep.subr.bf16.mxu1 %v2160_v3 }
 0x380   :  { %1979 = vmatpush3.bf16.msra.mxu1 %v2309_v33 }
 0x381   :  { %2010 = vmatprep.subr.bf16.mxu1 %v2160_v3 }
 0x436   :  { %v417_v49 = vpop.f32.mrb[4].mxu1 }
 0x437   :  { %v421_v50 = vmul.f32 %v417_v49, %v2316_v34  ;;  %v1624_v51 = vpop.f32.mrb[5].mxu1 }
 0x439   :  { %1658 = vmatmul.mubr.f32.vlgmr.msra.gmra.mrb[6].mxu1 %v421_v50 }
 0x43a   :  { %2012 = vmatpush3.bf16.msra.mxu1 %v2206_v4  ;;  %1714 = vmatprep.mubr.msk.f32.mxu1 %vm2161_vm0, %v2162_v6 }
 0x43b   :  { %2013 = vmatprep.subr.bf16.mxu1 %v2160_v3 }
 0x43e   :  { %2015 = vmatpush3.bf16.msra.mxu1 %v2221_v8 }
 0x43f   :  { %2016 = vmatprep.subr.bf16.mxu1 %v2160_v3 }
 0x50c   :  { %v488_v53 = vpop.f32.mrb[6].mxu1 }
 0x50d   :  { %v494_v54 = vadd.f32 %v1335_v52, %v488_v53  ;;  %v1659_v55 = vpop.f32.mrb[7].mxu1 }
 0x50f   :  { %496 = vst.msk [vmem:[#allocation3 + $0x4] sm:$0x3] %vm26_vm1, %v494_v54  ;;  %1669 = vmatmul.mubr.msk.f32.vlgmr.msra.gmra.mrb[4].mxu0 %vm50_vm2, %v494_v54 }
 0x510   :  { %1988 = vmatpush3.bf16.msra.mxu0 %v2233_v11  ;;  %1703 = vmatprep.mubr.msk.f32.mxu0 %vm2161_vm0, %v2162_v6 }
 0x511   :  { %1989 = vmatprep.subr.bf16.mxu0 %v2160_v3 }
 0x514   :  { %1991 = vmatpush3.bf16.msra.mxu0 %v2246_v15 }
 0x515   :  { %1992 = vmatprep.subr.bf16.mxu0 %v2160_v3 }
 0x516   :  { %v1245_v28 = vld [vmem:[#allocation3 + $0x4] sm:$0x1] }
 0x517   :  { %v1262_v37 = vrot.slane %v1245_v28, 6 }
 0x518   :  { %1994 = vmatpush3.bf16.msra.mxu0 %v2258_v18 }
 0x519   :  { %1995 = vmatprep.subr.bf16.mxu0 %v2160_v3 }
 0x51c   :  { %1997 = vmatpush3.bf16.msra.mxu0 %v2268_v21 }
 0x51d   :  { %1998 = vmatprep.subr.bf16.mxu0 %v2160_v3 }
 0x520   :  { %2000 = vmatpush3.bf16.msra.mxu0 %v2278_v24 }
 0x521   :  { %2001 = vmatprep.subr.bf16.mxu0 %v2160_v3 }
 0x524   :  { %2003 = vmatpush3.bf16.msra.mxu0 %v2288_v27 }
 0x525   :  { %2004 = vmatprep.subr.bf16.mxu0 %v2160_v3 }
 0x528   :  { %2006 = vmatpush3.bf16.msra.mxu0 %v2298_v30 }
 0x529   :  { %2007 = vmatprep.subr.bf16.mxu0 %v2160_v3 }
 0x52c   :  { %2009 = vmatpush3.bf16.msra.mxu0 %v2309_v33 }
 0x52d   :  { %2040 = vmatprep.subr.bf16.mxu0 %v2160_v3 }
 0x5e2   :  { %v566_v56 = vpop.f32.mrb[4].mxu0 }
 0x5e3   :  { %v570_v57 = vmul.f32 %v566_v56, %v2316_v34  ;;  %v1670_v58 = vpop.f32.mrb[5].mxu0 }
 0x5e5   :  { %1704 = vmatmul.mubr.f32.vlgmr.msra.gmra.mrb[6].mxu0 %v570_v57 }
 0x5e6   :  { %2042 = vmatpush3.bf16.msra.mxu0 %v2206_v4  ;;  %1760 = vmatprep.mubr.msk.f32.mxu0 %vm2161_vm0, %v2162_v6 }
 0x5e7   :  { %2043 = vmatprep.subr.bf16.mxu0 %v2160_v3 }
 0x5ea   :  { %2045 = vmatpush3.bf16.msra.mxu0 %v2221_v8 }
 0x5eb   :  { %2046 = vmatprep.subr.bf16.mxu0 %v2160_v3 }
 0x6b8   :  { %v637_v60 = vpop.f32.mrb[6].mxu0 }
 0x6b9   :  { %v643_v61 = vadd.f32 %v1337_v59, %v637_v60  ;;  %v1705_v62 = vpop.f32.mrb[7].mxu0 }
 0x6bb   :  { %645 = vst.msk [vmem:[#allocation3 + $0x6] sm:$0x3] %vm26_vm1, %v643_v61  ;;  %1715 = vmatmul.mubr.msk.f32.vlgmr.msra.gmra.mrb[8].mxu1 %vm50_vm2, %v643_v61 }
 0x6bc   :  { %2018 = vmatpush3.bf16.msra.mxu1 %v2233_v11  ;;  %1749 = vmatprep.mubr.msk.f32.mxu1 %vm2161_vm0, %v2162_v6 }
 0x6bd   :  { %2019 = vmatprep.subr.bf16.mxu1 %v2160_v3 }
 0x6c0   :  { %2021 = vmatpush3.bf16.msra.mxu1 %v2246_v15 }
 0x6c1   :  { %2022 = vmatprep.subr.bf16.mxu1 %v2160_v3 }
 0x6c4   :  { %2024 = vmatpush3.bf16.msra.mxu1 %v2258_v18 }
 0x6c5   :  { %2025 = vmatprep.subr.bf16.mxu1 %v2160_v3 }
 0x6c8   :  { %2027 = vmatpush3.bf16.msra.mxu1 %v2268_v21 }
 0x6c9   :  { %2028 = vmatprep.subr.bf16.mxu1 %v2160_v3 }
 0x6cc   :  { %2030 = vmatpush3.bf16.msra.mxu1 %v2278_v24 }
 0x6cd   :  { %2031 = vmatprep.subr.bf16.mxu1 %v2160_v3 }
 0x6d0   :  { %2033 = vmatpush3.bf16.msra.mxu1 %v2288_v27 }
 0x6d1   :  { %2034 = vmatprep.subr.bf16.mxu1 %v2160_v3 }
 0x6d4   :  { %2036 = vmatpush3.bf16.msra.mxu1 %v2298_v30 }
 0x6d5   :  { %2037 = vmatprep.subr.bf16.mxu1 %v2160_v3 }
 0x6d8   :  { %2039 = vmatpush3.bf16.msra.mxu1 %v2309_v33 }
 0x6d9   :  { %2070 = vmatprep.subr.bf16.mxu1 %v2160_v3 }
 0x78e   :  { %v715_v63 = vpop.f32.mrb[8].mxu1 }
 0x78f   :  { %v719_v0 = vmul.f32 %v715_v63, %v2316_v34  ;;  %v1716_v1 = vpop.f32.mrb[9].mxu1 }
 0x791   :  { %1750 = vmatmul.mubr.f32.vlgmr.msra.gmra.mrb[10].mxu1 %v719_v0 }
 0x792   :  { %2072 = vmatpush3.bf16.msra.mxu1 %v2206_v4  ;;  %1806 = vmatprep.mubr.msk.f32.mxu1 %vm2161_vm0, %v2162_v6 }
 0x793   :  { %2073 = vmatprep.subr.bf16.mxu1 %v2160_v3 }
 0x796   :  { %2075 = vmatpush3.bf16.msra.mxu1 %v2221_v8 }
 0x797   :  { %2076 = vmatprep.subr.bf16.mxu1 %v2160_v3 }
 0x864   :  { %v786_v5 = vpop.f32.mrb[10].mxu1 }
 0x865   :  { %v792_v7 = vadd.f32 %v1339_v2, %v786_v5  ;;  %v1751_v9 = vpop.f32.mrb[11].mxu1 }
 0x867   :  { %794 = vst.msk [vmem:[#allocation3 + $0x8] sm:$0x3] %vm26_vm1, %v792_v7  ;;  %1761 = vmatmul.mubr.msk.f32.vlgmr.msra.gmra.mrb[8].mxu0 %vm50_vm2, %v792_v7 }
 0x868   :  { %2048 = vmatpush3.bf16.msra.mxu0 %v2233_v11  ;;  %1795 = vmatprep.mubr.msk.f32.mxu0 %vm2161_vm0, %v2162_v6 }
 0x869   :  { %2049 = vmatprep.subr.bf16.mxu0 %v2160_v3 }
 0x86c   :  { %2051 = vmatpush3.bf16.msra.mxu0 %v2246_v15 }
 0x86d   :  { %2052 = vmatprep.subr.bf16.mxu0 %v2160_v3 }
 0x86e   :  { %v1286_v39 = vld [vmem:[#allocation3 + $0x9] sm:$0x1] }
 0x86f   :  { %v1304_v50 = vrot.slane %v1286_v39, 4 }
 0x870   :  { %2054 = vmatpush3.bf16.msra.mxu0 %v2258_v18 }
 0x871   :  { %2055 = vmatprep.subr.bf16.mxu0 %v2160_v3 }
 0x874   :  { %2057 = vmatpush3.bf16.msra.mxu0 %v2268_v21 }
 0x875   :  { %2058 = vmatprep.subr.bf16.mxu0 %v2160_v3 }
 0x878   :  { %2060 = vmatpush3.bf16.msra.mxu0 %v2278_v24 }
 0x879   :  { %2061 = vmatprep.subr.bf16.mxu0 %v2160_v3 }
 0x87c   :  { %2063 = vmatpush3.bf16.msra.mxu0 %v2288_v27 }
 0x87d   :  { %2064 = vmatprep.subr.bf16.mxu0 %v2160_v3 }
 0x880   :  { %2066 = vmatpush3.bf16.msra.mxu0 %v2298_v30 }
 0x881   :  { %2067 = vmatprep.subr.bf16.mxu0 %v2160_v3 }
 0x884   :  { %2069 = vmatpush3.bf16.msra.mxu0 %v2309_v33 }
 0x885   :  { %2100 = vmatprep.subr.bf16.mxu0 %v2160_v3 }
 0x93a   :  { %v864_v10 = vpop.f32.mrb[8].mxu0 }
 0x93b   :  { %v868_v12 = vmul.f32 %v864_v10, %v2316_v34  ;;  %v1762_v13 = vpop.f32.mrb[9].mxu0 }
 0x93d   :  { %1796 = vmatmul.mubr.f32.vlgmr.msra.gmra.mrb[10].mxu0 %v868_v12 }
 0x93e   :  { %2102 = vmatpush3.bf16.msra.mxu0 %v2206_v4  ;;  %1852 = vmatprep.mubr.msk.f32.mxu0 %vm2161_vm0, %v2162_v6 }
 0x93f   :  { %2103 = vmatprep.subr.bf16.mxu0 %v2160_v3 }
 0x942   :  { %2105 = vmatpush3.bf16.msra.mxu0 %v2221_v8 }
 0x943   :  { %2106 = vmatprep.subr.bf16.mxu0 %v2160_v3 }
 0xa10   :  { %v935_v16 = vpop.f32.mrb[10].mxu0 }
 0xa11   :  { %v941_v17 = vadd.f32 %v1341_v14, %v935_v16  ;;  %v1797_v19 = vpop.f32.mrb[11].mxu0 }
 0xa13   :  { %943 = vst.msk [vmem:[#allocation3 + $0xa] sm:$0x3] %vm26_vm1, %v941_v17  ;;  %1807 = vmatmul.mubr.msk.f32.vlgmr.msra.gmra.mrb[12].mxu1 %vm50_vm2, %v941_v17 }
 0xa14   :  { %2078 = vmatpush3.bf16.msra.mxu1 %v2233_v11  ;;  %1841 = vmatprep.mubr.msk.f32.mxu1 %vm2161_vm0, %v2162_v6 }
 0xa15   :  { %2079 = vmatprep.subr.bf16.mxu1 %v2160_v3 }
 0xa18   :  { %2081 = vmatpush3.bf16.msra.mxu1 %v2246_v15 }
 0xa19   :  { %2082 = vmatprep.subr.bf16.mxu1 %v2160_v3 }
 0xa1a   :  { %v1248_v40 = vld [vmem:[#allocation3 + $0xa] sm:$0x1]  ;;  %v1287_v42 = vld [vmem:[#allocation3 + $0xb] sm:$0x1] }
 0xa1b   :  { %v1271_v52 = vrot.slane %v1248_v40, 3  ;;  %v1306_v53 = vrot.slane %v1287_v42, 3 }
 0xa1c   :  { %2084 = vmatpush3.bf16.msra.mxu1 %v2258_v18 }
 0xa1d   :  { %2085 = vmatprep.subr.bf16.mxu1 %v2160_v3 }
 0xa20   :  { %2087 = vmatpush3.bf16.msra.mxu1 %v2268_v21 }
 0xa21   :  { %2088 = vmatprep.subr.bf16.mxu1 %v2160_v3 }
 0xa24   :  { %2090 = vmatpush3.bf16.msra.mxu1 %v2278_v24 }
 0xa25   :  { %2091 = vmatprep.subr.bf16.mxu1 %v2160_v3 }
 0xa28   :  { %2093 = vmatpush3.bf16.msra.mxu1 %v2288_v27 }
 0xa29   :  { %2094 = vmatprep.subr.bf16.mxu1 %v2160_v3 }
 0xa2c   :  { %2096 = vmatpush3.bf16.msra.mxu1 %v2298_v30 }
 0xa2d   :  { %2097 = vmatprep.subr.bf16.mxu1 %v2160_v3 }
 0xa30   :  { %2099 = vmatpush3.bf16.msra.mxu1 %v2309_v33 }
 0xae6   :  { %v1013_v4 = vpop.f32.mrb[12].mxu1 }
 0xae7   :  { %v1017_v8 = vmul.f32 %v1013_v4, %v2316_v34  ;;  %v1808_v20 = vpop.f32.mrb[13].mxu1 }
 0xae9   :  { %1842 = vmatmul.mubr.f32.vlgmr.msra.gmra.mrb[14].mxu1 %v1017_v8 }
 0xbbc   :  { %v1084_v23 = vpop.f32.mrb[14].mxu1 }
 0xbbd   :  { %v1090_v25 = vadd.f32 %v1343_v22, %v1084_v23  ;;  %v1843_v26 = vpop.f32.mrb[15].mxu1 }
 0xbbf   :  { %1092 = vst.msk [vmem:[#allocation3 + $0xc] sm:$0x3] %vm26_vm1, %v1090_v25  ;;  %1853 = vmatmul.mubr.msk.f32.vlgmr.msra.gmra.mrb[12].mxu0 %vm50_vm2, %v1090_v25 }
 0xbc0   :  { %2108 = vmatpush3.bf16.msra.mxu0 %v2233_v11  ;;  %1887 = vmatprep.mubr.msk.f32.mxu0 %vm2161_vm0, %v2162_v6 }
 0xbc1   :  { %2109 = vmatprep.subr.bf16.mxu0 %v2160_v3 }
 0xbc4   :  { %2111 = vmatpush3.bf16.msra.mxu0 %v2246_v15 }
 0xbc5   :  { %2112 = vmatprep.subr.bf16.mxu0 %v2160_v3 }
 0xbc6   :  { %v1249_v44 = vld [vmem:[#allocation3 + $0xc] sm:$0x1]  ;;  %v1288_v46 = vld [vmem:[#allocation3 + $0xd] sm:$0x1] }
 0xbc7   :  { %v1274_v54 = vrot.slane %v1249_v44, 2  ;;  %v1308_v56 = vrot.slane %v1288_v46, 2 }
 0xbc8   :  { %2114 = vmatpush3.bf16.msra.mxu0 %v2258_v18  ;;  %v1345_v18 = vld [vmem:[%s2550_s0 + $0xe] sm:$0x3]  ;;  %s2163_s0 = smov [#allocation4]  }
 0xbc9   :  { %2115 = vmatprep.subr.bf16.mxu0 %v2160_v3  ;;  %s1320_s22 = sshll.u32 %s2163_s0, 4  ;;  %s1321_s22 = int_to_ptr.vmem [resolvable:$true] %s1320_s22 }
 0xbca   :  { %s2136_s23 = scalar_lea.vmem %s1321_s22, 256  ;;  %p2141_p1 = scmp.lt.s32.totalorder %s1321_s22, %s1321_s22 }
 0xbcb   :  { %p2137_p0 = scmp.ne.s32.totalorder %s1321_s22, %s2136_s23  ;;  %p2142_p2 = scmp.lt.s32.totalorder %s2136_s23, %s2136_s23 }
 0xbcc   :  { %2117 = vmatpush3.bf16.msra.mxu0 %v2268_v21  ;;  %v1244_v21 = vld [vmem:[#allocation3 + $0x2] sm:$0x1] }
 0xbcd   :  { %2118 = vmatprep.subr.bf16.mxu0 %v2160_v3  ;;  %v1259_v32 = vrot.slane %v1244_v21, 7  ;;  %p2143_p3 = por %p2142_p2, %p2141_p1 }
 0xbcf   :  { %v1261_v45 = vsel %vm1260_vm3, %v1259_v32, %v1243_v35  ;;  %p2144_p4 = pnand %p2143_p3, %p2137_p0 }
 0xbd0   :  { %2120 = vmatpush3.bf16.msra.mxu0 %v2278_v24  ;;  %v1283_v24 = vld [vmem:[#allocation3 + $0x3] sm:$0x1]  ;;  %v1264_v51 = vsel %vm1263_vm4, %v1262_v37, %v1261_v45 }
 0xbd1   :  { %2121 = vmatprep.subr.bf16.mxu0 %v2160_v3  ;;  %v1298_v36 = vrot.slane %v1283_v24, 7 }
 0xbd3   :  { %v1299_v49 = vsel %vm1260_vm3, %v1298_v36, %v1282_v38 }
 0xbd4   :  { %2123 = vmatpush3.bf16.msra.mxu0 %v2288_v27 }
 0xbd5   :  { %2124 = vmatprep.subr.bf16.mxu0 %v2160_v3 }
 0xbd8   :  { %2126 = vmatpush3.bf16.msra.mxu0 %v2298_v30  ;;  %v1246_v30 = vld [vmem:[#allocation3 + $0x6] sm:$0x1] }
 0xbd9   :  { %2127 = vmatprep.subr.bf16.mxu0 %v2160_v3  ;;  %v1284_v3 = vld [vmem:[#allocation3 + $0x5] sm:$0x1]  ;;  %v1265_v41 = vrot.slane %v1246_v30, 5 }
 0xbda   :  { %v1300_v43 = vrot.slane %v1284_v3, 6 }
 0xbdb   :  { %v1267_v57 = vsel %vm1266_vm5, %v1265_v41, %v1264_v51 }
 0xbdc   :  { %2129 = vmatpush3.bf16.msra.mxu0 %v2309_v33  ;;  %v1285_v33 = vld [vmem:[#allocation3 + $0x7] sm:$0x1]  ;;  %v1301_v55 = vsel %vm1263_vm4, %v1300_v43, %v1299_v49 }
 0xbdd   :  { %v1302_v47 = vrot.slane %v1285_v33, 5 }
 0xbdf   :  { %v1303_v58 = vsel %vm1266_vm5, %v1302_v47, %v1301_v55 }
 0xbe0   :  { %v1305_v62 = vsel %vm1269_vm6, %v1304_v50, %v1303_v58 }
 0xbe1   :  { %v1307_v1 = vsel %vm1272_vm7, %v1306_v53, %v1305_v62 }
 0xbe2   :  { %v1309_v7 = vsel %vm1275_vm8, %v1308_v56, %v1307_v1 }
 0xc92   :  { %v1162_v6 = vpop.f32.mrb[12].mxu0 }
 0xc93   :  { %v1166_v11 = vmul.f32 %v1162_v6, %v2316_v34  ;;  %v1854_v15 = vpop.f32.mrb[13].mxu0  ;;  %v1247_v34 = vld [vmem:[#allocation3 + $0x8] sm:$0x1] }
 0xc94   :  { %v1268_v48 = vrot.slane %v1247_v34, 4 }
 0xc95   :  { %1888 = vmatmul.mubr.f32.vlgmr.msra.gmra.mrb[14].mxu0 %v1166_v11 }
 0xc96   :  { %v1270_v60 = vsel %vm1269_vm6, %v1268_v48, %v1267_v57 }
 0xc97   :  { %v1273_v63 = vsel %vm1272_vm7, %v1271_v52, %v1270_v60 }
 0xc98   :  { %v1276_v5 = vsel %vm1275_vm8, %v1274_v54, %v1273_v63 }
 0xd68   :  { %v1233_v27 = vpop.f32.mrb[14].mxu0 }
 0xd69   :  { %v1239_v29 = vadd.f32 %v1345_v18, %v1233_v27  ;;  %v1889_v31 = vpop.f32.mrb[15].mxu0 }
 0xd6b   :  { %1241 = vst.msk [vmem:[#allocation3 + $0xe] sm:$0x3] %vm26_vm1, %v1239_v29  ;;  %1242 = vst.msk [vmem:[#allocation2] sm:$0x3] %vm26_vm1, %v1239_v29 }
 0xd72   :  { %v1250_v59 = vld [vmem:[#allocation3 + $0xe] sm:$0x1]  ;;  %v1289_v61 = vld [vmem:[#allocation3 + $0xf] sm:$0x1] }
 0xd73   :  { %v1277_v0 = vrot.slane %v1250_v59, 1  ;;  %v1310_v2 = vrot.slane %v1289_v61, 1 }
 0xd75   :  { %v1279_v9 = vsel %vm1278_vm9, %v1277_v0, %v1276_v5  ;;  %v1311_v10 = vsel %vm1278_vm9, %v1310_v2, %v1309_v7 }
 0xd76   :  { %1281 = vst.msk [vmem:[#allocation4] sm:$0xff] %vm50_vm2, %v1279_v9  ;;  %1314 = vst.msk [vmem:[#allocation4 + $0x8] sm:$0xff] %vm50_vm2, %v1311_v10 }
 0xd77   :  { %2147 = shalt.err (!%p2144_p4)
}
 0xd78   :  { %s2148_s26 = scalar_lea.hbm %s2555_s5, 256 }
 0xd79   :  { %p2149_p5 = scmp.ne.s32.totalorder %s2555_s5, %s2148_s26  ;;  %p2152_p6 = scmp.lt.u32.totalorder %s2148_s26, %s2555_s5 }
 0xd7b   :  { %p2154_p7 = pnand %p2152_p6, %p2149_p5 }
 0xd7d   :  { %2157 = shalt.err (!%p2154_p7)
}
 0xd7e   :  { %s2164_s29 = smov 128   ;;  %s2165_s30 = smov 8  }
 0xd7f   :  { %1326 = dma.vmem_to_hbm [thread:$0]  %s1321_s22, 256, %s2555_s5, [#allocation5], %s2164_s29, %s2164_s29, %s2165_s30  }
 0xd80   :  { %2158 = dma.done.wait [#allocation5], 256  }
 0xd81   :  { %2159 = vsyncadd [#allocation5], 4294967040 }
 0xd82   :  { %1330 = vsyncpa [#allocation5], 1 }

</bundles_post_ra>
